<compile_context>
chip_gen: v5e
topology: v5e:2x2
jax: 0.10.0
libtpu: 0.0.40
codegen_flags: <defaults>
</compile_context>

<pallas_src>
import math

import jax
import jax.numpy as jnp
from jax.experimental import pallas as pl
from jax.experimental.pallas import tpu as pltpu


def _dma_view_kernel(x_hbm, o_hbm, sem):
    # One whole-array HBM->HBM DMA: the DMA engine does the streaming copy,
    # consuming no vector load/store slots and no VMEM.
    cp = pltpu.make_async_copy(x_hbm, o_hbm, sem)
    cp.start()
    cp.wait()


def _resolve_shape(batch, total, shape):
    """Resolve a PyTorch-style view shape (may contain a single -1)."""
    shape = tuple(int(s) for s in shape)
    per_batch = total // batch
    if -1 in shape:
        assert shape.count(-1) == 1, "at most one -1 allowed in view shape"
        known = 1
        for s in shape:
            if s != -1:
                known *= s
        assert known != 0 and per_batch % known == 0, \
            "view shape incompatible with input"
        shape = tuple(per_batch // known if s == -1 else s for s in shape)
    assert math.prod(shape) == per_batch, "view shape incompatible with input"
    return shape


def _pallas_hbm_copy(x):
    """Materialize `x` into a fresh buffer via one HBM->HBM DMA."""
    bytes_moved = 2 * x.size * x.dtype.itemsize  # read + write
    return pl.pallas_call(
        _dma_view_kernel,
        out_shape=jax.ShapeDtypeStruct(x.shape, x.dtype),
        in_specs=[pl.BlockSpec(memory_space=pl.ANY)],
        out_specs=pl.BlockSpec(memory_space=pl.ANY),
        scratch_shapes=[pltpu.SemaphoreType.DMA(())],
        cost_estimate=pl.CostEstimate(
            flops=0, transcendentals=0, bytes_accessed=bytes_moved),
    )(x)


def view_pallas(x, *shape):
    """Equivalent of PyTorch `x.view(x.size(0), *shape)`.

    Shape reinterpretation is zero-cost wrapper glue on the contiguous buffer;
    the data materialization is a single HBM->HBM DMA inside a Pallas kernel.
    """
    b = x.shape[0]
    total = x.size
    out_shape = _resolve_shape(b, total, shape)
    # Zero-cost reinterpretation of the contiguous buffer to the target view.
    x_view = jnp.reshape(x, (b,) + out_shape)
    return _pallas_hbm_copy(x_view)


if __name__ == "__main__":
    key = jax.random.PRNGKey(0)
    # Small NCHW input consistent with the module's typical use.
    x = jax.random.normal(key, (2, 4, 16, 16), dtype=jnp.float32)

    # References computed up front (plain reshape == torch.view semantics).
    ref1 = jnp.reshape(x, (2, 64, 16))
    ref2 = jnp.reshape(x, (2, 1024))

    # Equivalent of View(-1, 16): (2, 4, 16, 16) -> (2, 64, 16)
    y1 = jax.block_until_ready(view_pallas(x, -1, 16))
    assert y1.shape == (2, 64, 16), y1.shape
    assert y1.dtype == x.dtype
    assert bool(jnp.all(y1 == ref1))

    # Equivalent of View(-1): (2, 4, 16, 16) -> (2, 1024)
    y2 = jax.block_until_ready(view_pallas(x, -1))
    assert y2.shape == (2, 1024), y2.shape
    assert bool(jnp.all(y2 == ref2))

    # A non-128-aligned per-batch size (no tiling constraints on the DMA path):
    # (2, 3, 5, 13) -> (2, 15, 13)
    x3 = jax.random.normal(jax.random.PRNGKey(0), (2, 3, 5, 13), dtype=jnp.float32)
    ref3 = jnp.reshape(x3, (2, 15, 13))
    y3 = jax.block_until_ready(view_pallas(x3, 15, 13))
    assert y3.shape == (2, 15, 13), y3.shape
    assert bool(jnp.all(y3 == ref3))

    # bf16 path (sub-32-bit dtype is irrelevant to the DMA, but exercise it).
    xb = jax.random.normal(jax.random.PRNGKey(0), (2, 4, 16, 16),
                           dtype=jnp.bfloat16)
    refb = jnp.reshape(xb, (2, 64, 16))
    yb = jax.block_until_ready(view_pallas(xb, 64, 16))
    assert yb.shape == (2, 64, 16) and yb.dtype == jnp.bfloat16
    assert bool(jnp.all(yb == refb))

    print("KERNEL_OK")
</pallas_src>

<mosaic_0001>
module attributes {stable_mosaic.version = 11 : i64} {
  func.func @_dma_view_kernel(%arg0: memref<2x64x16xf32, #tpu.memory_space<any>>, %arg1: memref<2x64x16xf32, #tpu.memory_space<any>>, %arg2: memref<!tpu.dma_semaphore, #tpu.memory_space<semaphore_mem>>) attributes {dimension_semantics = [], scalar_prefetch = 0 : i64, scratch_operands = 1 : i64, tpu.core_type = #tpu.core_type<tc>} {
    tpu.enqueue_dma source(%arg0 : memref<2x64x16xf32, #tpu.memory_space<any>>) target(%arg1 : memref<2x64x16xf32, #tpu.memory_space<any>>) target_semaphore(%arg2 : memref<!tpu.dma_semaphore, #tpu.memory_space<semaphore_mem>>)
    tpu.wait_dma2 semaphore(%arg2 : memref<!tpu.dma_semaphore, #tpu.memory_space<semaphore_mem>>) src(%arg0 : memref<2x64x16xf32, #tpu.memory_space<any>>) dst(%arg1 : memref<2x64x16xf32, #tpu.memory_space<any>>)
    return
  }
}

</mosaic_0001>

<bundles_post_ra>
// kernel: tpu_custom_call.1
= control target key start
LH: loop header
LB: loop body
LE: loop exit
PB: predicated region body
PF: predicated region fallthrough
CT: control target
= control target key end

     0   :  { %s177_s0 = inlined_call_operand.vmem [shape: f32[2,64,16], index: 0, kind: input, shape index: {}]   ;;  %s178_s1 = inlined_call_operand.vmem [shape: f32[2,64,16], index: 1, kind: output, shape index: {}]  }
   0x1   :  { %v16_v0 = vld [vmem:[%s177_s0] sm:$0xff]  ;;  %v18_v1 = vld [vmem:[%s177_s0 + $0x8] sm:$0xff]  ;;  %v20_v2 = vld [vmem:[%s177_s0 + $0x10] sm:$0xff] }
   0x2   :  { %17 = vst [vmem:[%s178_s1] sm:$0xff] %v16_v0  ;;  %v22_v3 = vld [vmem:[%s177_s0 + $0x18] sm:$0xff]  ;;  %v24_v4 = vld [vmem:[%s177_s0 + $0x20] sm:$0xff]  ;;  %v26_v5 = vld [vmem:[%s177_s0 + $0x28] sm:$0xff] }
   0x3   :  { %19 = vst [vmem:[%s178_s1 + $0x8] sm:$0xff] %v18_v1  ;;  %v28_v6 = vld [vmem:[%s177_s0 + $0x30] sm:$0xff]  ;;  %v30_v7 = vld [vmem:[%s177_s0 + $0x38] sm:$0xff]  ;;  %v32_v8 = vld [vmem:[%s177_s0 + $0x40] sm:$0xff] }
   0x4   :  { %21 = vst [vmem:[%s178_s1 + $0x10] sm:$0xff] %v20_v2  ;;  %v34_v9 = vld [vmem:[%s177_s0 + $0x48] sm:$0xff]  ;;  %v36_v10 = vld [vmem:[%s177_s0 + $0x50] sm:$0xff]  ;;  %v38_v11 = vld [vmem:[%s177_s0 + $0x58] sm:$0xff] }
   0x5   :  { %23 = vst [vmem:[%s178_s1 + $0x18] sm:$0xff] %v22_v3  ;;  %v40_v12 = vld [vmem:[%s177_s0 + $0x60] sm:$0xff]  ;;  %v42_v13 = vld [vmem:[%s177_s0 + $0x68] sm:$0xff]  ;;  %v44_v14 = vld [vmem:[%s177_s0 + $0x70] sm:$0xff] }
   0x6   :  { %25 = vst [vmem:[%s178_s1 + $0x20] sm:$0xff] %v24_v4  ;;  %v46_v15 = vld [vmem:[%s177_s0 + $0x78] sm:$0xff] }
   0x7   :  { %27 = vst [vmem:[%s178_s1 + $0x28] sm:$0xff] %v26_v5 }
   0x8   :  { %29 = vst [vmem:[%s178_s1 + $0x30] sm:$0xff] %v28_v6 }
   0x9   :  { %31 = vst [vmem:[%s178_s1 + $0x38] sm:$0xff] %v30_v7 }
   0xa   :  { %33 = vst [vmem:[%s178_s1 + $0x40] sm:$0xff] %v32_v8 }
   0xb   :  { %35 = vst [vmem:[%s178_s1 + $0x48] sm:$0xff] %v34_v9 }
   0xc   :  { %37 = vst [vmem:[%s178_s1 + $0x50] sm:$0xff] %v36_v10 }
   0xd   :  { %39 = vst [vmem:[%s178_s1 + $0x58] sm:$0xff] %v38_v11 }
   0xe   :  { %41 = vst [vmem:[%s178_s1 + $0x60] sm:$0xff] %v40_v12 }
   0xf   :  { %43 = vst [vmem:[%s178_s1 + $0x68] sm:$0xff] %v42_v13 }
  0x10   :  { %45 = vst [vmem:[%s178_s1 + $0x70] sm:$0xff] %v44_v14 }
  0x11   :  { %47 = vst [vmem:[%s178_s1 + $0x78] sm:$0xff] %v46_v15 }
  0x12   :  { %53 = vsyncadd [#allocation2], 2048 }
  0x13   :  { %69 = dma.done.wait [#allocation2], 2048 }
  0x14   :  { %70 = vsyncadd [#allocation2], 4294965248 }
  0x15   :  { %58 = vsyncmov [#allocation2] }
  0x18   :  { %s59_s12 = vpop.sfrf %58 }
  0x19   :  { %p68_p0 = scmp.ne.s32.totalorder %s59_s12, 0 }
  0x1b   :  { %63 = shalt.err (%p68_p0)  }

</bundles_post_ra>
